<compile_context>
chip_gen: v7x
topology: tpu7x:2x2x1
jax: 0.10.0
libtpu: 0.0.40
codegen_flags: <defaults>
</compile_context>

<pallas_src>
import functools
import math

import jax
import jax.numpy as jnp
from jax import lax
from jax.experimental import pallas as pl
from jax.experimental.pallas import tpu as pltpu


def _pe_dropout_kernel(seed_ref, x_ref, pe_ref, o_ref, *, p, training, n_cols):
    # x_ref / o_ref: (B, TC) tile of the flattened (B, S*D) activations.
    # pe_ref:        (1, TC) tile of the flattened positional-encoding slab.
    y = x_ref[...] + pe_ref[...]  # broadcast PE over batch rows (sublanes)

    if training and p > 0.0:
        rows, cols = x_ref.shape
        c = pl.program_id(0)
        # Global flat element index (batch-major over the flattened array),
        # offset by the pre-mixed seed held in SMEM.
        row_ids = lax.broadcasted_iota(jnp.int32, (rows, cols), 0)
        col_ids = lax.broadcasted_iota(jnp.int32, (rows, cols), 1) + c * cols
        idx = row_ids * n_cols + col_ids + seed_ref[0]
        # Stateless counter hash (lowbias32-style bijective mixer).
        h = idx.astype(jnp.uint32)
        h = (h ^ (h >> 16)) * jnp.uint32(0x7FEB352D)
        h = (h ^ (h >> 15)) * jnp.uint32(0x846CA68B)
        h = h ^ (h >> 16)
        # Integer threshold compare: P(h < p * 2^32) = p  -> drop with prob p.
        thresh = min(int(round(p * float(1 << 32))), (1 << 32) - 1)
        keep = h >= jnp.uint32(thresh)
        scale = jnp.asarray(1.0 / (1.0 - p), dtype=y.dtype)
        y = jnp.where(keep, y * scale, jnp.zeros_like(y))

    o_ref[...] = y.astype(o_ref.dtype)


def make_pe_table(d_model, max_len=5000, dtype=jnp.float32):
    """Same sinusoidal table as the PyTorch module: shape (1, max_len, d_model)."""
    position = jnp.arange(max_len, dtype=jnp.float32)[:, None]            # (max_len, 1)
    div_term = jnp.exp(
        jnp.arange(0, d_model, 2, dtype=jnp.float32) * (-math.log(10000.0) / d_model)
    )                                                                      # (ceil(D/2),)
    angles = position * div_term                                           # (max_len, ceil(D/2))
    pe = jnp.zeros((max_len, d_model), jnp.float32)
    pe = pe.at[:, 0::2].set(jnp.sin(angles))
    pe = pe.at[:, 1::2].set(jnp.cos(angles[:, : d_model // 2]))
    return pe[None, :, :].astype(dtype)                                    # (1, max_len, D)


def positional_encoding_forward(x, pe_table, *, p=0.1, training=True, seed=0):
    """x: (B, S, D). pe_table: (1, max_len, D). Returns (B, S, D)."""
    B, S, D = x.shape
    N = S * D
    itemsize = jnp.dtype(x.dtype).itemsize

    # Flatten to (B, N): the op is elementwise (with PE broadcast over batch),
    # so this is pure layout plumbing that makes the last dim lane-dense.
    x2 = x.reshape(B, N)
    pe2 = pe_table[0, :S, :].astype(x.dtype).reshape(1, N)   # ship PE in x.dtype

    # Pre-mix the seed (golden-ratio multiply) on the host; stored as int32 bits.
    seed_mix = (int(seed) * 0x9E3779B9) & 0xFFFFFFFF
    if seed_mix >= (1 << 31):
        seed_mix -= 1 << 32
    seed_arr = jnp.array([seed_mix], dtype=jnp.int32)

    # Column tile: multiple of 128 when possible, sized so each x/out block is
    # ~1 MiB (x, pe, out double-buffered stays well inside even v7x's scoped
    # VMEM default) while leaving enough grid steps to pipeline the DMAs.
    if N >= 128:
        budget_cols = max(128, ((1 << 20) // max(B * itemsize, 1)) // 128 * 128)
        tc = min((N // 128) * 128, budget_cols)
    else:
        tc = N
    grid = (pl.cdiv(N, tc),)

    kernel = functools.partial(
        _pe_dropout_kernel, p=float(p), training=bool(training), n_cols=N
    )

    out2 = pl.pallas_call(
        kernel,
        out_shape=jax.ShapeDtypeStruct((B, N), x.dtype),
        grid_spec=pltpu.PrefetchScalarGridSpec(
            num_scalar_prefetch=1,                                # seed lives in SMEM
            grid=grid,
            in_specs=[
                pl.BlockSpec((B, tc), lambda c, seed: (0, c)),    # x column tile
                pl.BlockSpec((1, tc), lambda c, seed: (0, c)),    # matching PE tile
            ],
            out_specs=pl.BlockSpec((B, tc), lambda c, seed: (0, c)),
        ),
        compiler_params=pltpu.CompilerParams(
            dimension_semantics=("parallel",),                    # steps independent
        ),
        cost_estimate=pl.CostEstimate(
            flops=2 * B * N,
            transcendentals=0,
            bytes_accessed=(2 * B * N + N) * itemsize,
        ),
    )(seed_arr, x2, pe2)
    return out2.reshape(B, S, D)


if __name__ == "__main__":
    # Small shapes consistent with the module's [batch, seq, d_model] contract.
    B, S, D = 2, 8, 32
    key = jax.random.PRNGKey(0)
    x = jax.random.normal(key, (B, S, D), dtype=jnp.float32)

    pe_table = make_pe_table(d_model=D, max_len=5000)

    # Eval mode: dropout is identity -> must match x + pe.
    out_eval = jax.block_until_ready(
        positional_encoding_forward(x, pe_table, p=0.1, training=False)
    )
    ref = x + pe_table[:, :S, :]
    assert jnp.allclose(out_eval, ref, atol=1e-6), "PE add mismatch"

    # Training mode: every output must be either 0 (dropped) or (x+pe)/(1-p).
    p = 0.1
    out_train = jax.block_until_ready(
        positional_encoding_forward(x, pe_table, p=p, training=True, seed=42)
    )
    assert out_train.shape == (B, S, D)
    scaled = ref * jnp.float32(1.0 / (1.0 - p))
    is_zero = jnp.isclose(out_train, 0.0, atol=1e-7)
    ok = is_zero | jnp.isclose(out_train, scaled, atol=1e-5)
    assert bool(jnp.all(ok)), "dropout output not in {0, scaled(x+pe)}"
    drop_frac = float(jnp.mean(is_zero & ~jnp.isclose(scaled, 0.0, atol=1e-7)))
    assert 0.0 < drop_frac < 0.5, f"dropout rate looks wrong: {drop_frac}"

    print("KERNEL_OK")
</pallas_src>

<mosaic_0001>
module attributes {stable_mosaic.version = 11 : i64} {
  func.func @_pe_dropout_kernel(%arg0: i32, %arg1: memref<1xi32, #tpu.memory_space<smem>>, %arg2: memref<2x256xf32, #tpu.memory_space<vmem>>, %arg3: memref<1x256xf32, #tpu.memory_space<vmem>>, %arg4: memref<2x256xf32, #tpu.memory_space<vmem>>) attributes {dimension_semantics = [#tpu.dimension_semantics<parallel>], iteration_bounds = array<i64: 1>, scalar_prefetch = 1 : i64, scratch_operands = 0 : i64, tpu.core_type = #tpu.core_type<tc>, window_params = [{transform_indices = @transform_0, window_bounds = array<i64: 2, 256>}, {transform_indices = @transform_1, window_bounds = array<i64: 1, 256>}, {transform_indices = @transform_2, window_bounds = array<i64: 2, 256>}]} {
    %c0 = arith.constant 0 : index
    %c0_0 = arith.constant 0 : index
    %0 = vector.load %arg2[%c0, %c0_0] : memref<2x256xf32, #tpu.memory_space<vmem>>, vector<2x256xf32>
    %c0_1 = arith.constant 0 : index
    %c0_2 = arith.constant 0 : index
    %1 = vector.load %arg3[%c0_1, %c0_2] : memref<1x256xf32, #tpu.memory_space<vmem>>, vector<1x256xf32>
    %2 = vector.broadcast %1 : vector<1x256xf32> to vector<2x256xf32>
    %3 = arith.addf %0, %2 : vector<2x256xf32>
    %c0_3 = arith.constant 0 : index
    %c0_4 = arith.constant 0 : index
    %4 = vector.load %arg4[%c0_3, %c0_4] : memref<2x256xf32, #tpu.memory_space<vmem>>, vector<2x256xf32>
    tpu.vector_store %arg4[%c0_3, %c0_4], %3 {strides = array<i32>} : memref<2x256xf32, #tpu.memory_space<vmem>>, vector<2x256xf32>,
    return
  }
  func.func @transform_0(%arg0: i32, %arg1: memref<1xi32, #tpu.memory_space<smem>>) -> (i32, i32) {
    %c0_i32 = arith.constant 0 : i32
    %c0_i32_0 = arith.constant 0 : i32
    return %c0_i32, %arg0 : i32, i32
  }
  func.func @transform_1(%arg0: i32, %arg1: memref<1xi32, #tpu.memory_space<smem>>) -> (i32, i32) {
    %c0_i32 = arith.constant 0 : i32
    %c0_i32_0 = arith.constant 0 : i32
    return %c0_i32, %arg0 : i32, i32
  }
  func.func @transform_2(%arg0: i32, %arg1: memref<1xi32, #tpu.memory_space<smem>>) -> (i32, i32) {
    %c0_i32 = arith.constant 0 : i32
    %c0_i32_0 = arith.constant 0 : i32
    return %c0_i32, %arg0 : i32, i32
  }
}

</mosaic_0001>

<bundles_post_ra>
// kernel: tpu_custom_call.1
= control target key start
LH: loop header
LB: loop body
LE: loop exit
PB: predicated region body
PF: predicated region fallthrough
CT: control target
= control target key end

     0   :  { %9 = vsyncpa [#allocation5], 0  ;;  %s164_s0 = inlined_call_operand.<no memory space> [shape: s32[1], index: 0, kind: input, shape index: {}]   ;;  %s165_s1 = inlined_call_operand.hbm [shape: f32[2,256], index: 1, kind: input, shape index: {}]   ;;  %s166_s2 = inlined_call_operand.vmem [shape: f32[1,256], index: 2, kind: input, shape index: {}]   ;;  %s167_s3 = inlined_call_operand.hbm [shape: f32[2,256], index: 3, kind: output, shape index: {}]  }
   0x1   :  { %10 = vsyncpa [#allocation6], 0  ;;  %s114_s12 = smov [#allocation4]   ;;  %s66_s16 = scalar_lea.hbm %s165_s1, 64 }
   0x2   :  { %s17_s13 = sshll.u32 %s114_s12, 4  ;;  %p67_p0 = scmp.ne.s32.totalorder %s165_s1, %s66_s16  ;;  %s18_s13 = int_to_ptr.vmem [resolvable:$true] %s17_s13 }
   0x3   :  { %p70_p1 = scmp.lt.u32.totalorder %s66_s16, %s165_s1 }
   0x5   :  { %p72_p2 = pnand %p70_p1, %p67_p0 }
   0x7   :  { %75 = shalt.err (!%p72_p2)
}
   0x8   :  { %s76_s20 = scalar_lea.vmem %s18_s13, 64  ;;  %p81_p4 = scmp.lt.s32.totalorder %s18_s13, %s18_s13 }
   0x9   :  { %p77_p3 = scmp.ne.s32.totalorder %s18_s13, %s76_s20  ;;  %p82_p5 = scmp.lt.s32.totalorder %s76_s20, %s76_s20 }
   0xb   :  { %p83_p6 = por %p82_p5, %p81_p4 }
   0xd   :  { %p84_p7 = pnand %p83_p6, %p77_p3 }
   0xf   :  { %87 = shalt.err (!%p84_p7)
}
  0x10   :  { %20 = dma.hbm_to_vmem [thread:$0]  %s165_s1, 64, %s18_s13, [#allocation5]  }
  0x11   :  { %110 = dma.done.wait [#allocation5], 64  }
  0x12   :  { %111 = vsyncadd [#allocation5], 4294967232  ;;  %v29_v0 = vlaneseq  ;;  %v115_v1 = vmov 1983009808   ;;  %v27_v7 = vld [vmem:[%s166_s2] sm:$0x3] }
  0x13   :  { %v39_v2 = vunpack.c.l.s4 %v115_v1  ;;  %v26_v12 = vld [vmem:[#allocation4] sm:$0xf]  ;;  %s116_s25 = smov [#allocation7]  }
  0x14   :  { %v30_v3 = vshrl.u32 %v29_v0, 7  ;;  %s54_s1 = sshll.u32 %s116_s25, 4  ;;  %s55_s1 = int_to_ptr.vmem [resolvable:$true] %s54_s1 }
  0x15   :  { %v40_v6 = vunpack.c.0.s8 %v39_v2  ;;  %s88_s26 = scalar_lea.vmem %s55_s1, 64  ;;  %p93_p9 = scmp.lt.s32.totalorder %s55_s1, %s55_s1 }
  0x16   :  { %v31_v4 = vsub.s32 0, %v30_v3  ;;  %v35_v5 = vsub.s32 1, %v30_v3  ;;  %p89_p8 = scmp.ne.s32.totalorder %s55_s1, %s88_s26  ;;  %p94_p10 = scmp.lt.s32.totalorder %s88_s26, %s88_s26 }
  0x17   :  { %v43_v10 = vsub.s32 %v40_v6, %v30_v3 }
  0x18   :  { %v32_v8 = vrot.slane %v27_v7, %v31_v4  ;;  %v36_v9 = vrot.slane %v27_v7, %v35_v5  ;;  %p95_p11 = por %p94_p10, %p93_p9 }
  0x1a   :  { %v37_v11 = vcombine.low %v32_v8, %v36_v9  ;;  %p96_p12 = pnand %p95_p11, %p89_p8 }
  0x1c   :  { %v44_v13 = vrot.slane %v37_v11, %v43_v10 }
  0x1e   :  { %v46_v14 = vadd.f32 %v44_v13, %v26_v12 }
  0x20   :  { %47 = vst [vmem:[#allocation7] sm:$0xf] %v46_v14 }
  0x21   :  { %99 = shalt.err (!%p96_p12)
}
  0x22   :  { %s100_s28 = scalar_lea.hbm %s167_s3, 64 }
  0x23   :  { %p101_p13 = scmp.ne.s32.totalorder %s167_s3, %s100_s28  ;;  %p104_p0 = scmp.lt.u32.totalorder %s100_s28, %s167_s3 }
  0x25   :  { %p106_p1 = pnand %p104_p0, %p101_p13 }
  0x27   :  { %109 = shalt.err (!%p106_p1)
}
  0x28   :  { %57 = dma.vmem_to_hbm [thread:$0]  %s55_s1, 64, %s167_s3, [#allocation6]  }
  0x29   :  { %112 = dma.done.wait [#allocation6], 64  }
  0x2a   :  { %113 = vsyncadd [#allocation6], 4294967232 }
  0x2b   :  { %61 = vsyncpa [#allocation5], 1 }
  0x2c   :  { %62 = vsyncpa [#allocation6], 1 }

</bundles_post_ra>
